<compile_context>
chip_gen: v7x
topology: tpu7x:2x2x1
jax: 0.10.0
libtpu: 0.0.40
codegen_flags: <defaults>
</compile_context>

<pallas_src>
from typing import Dict

import jax
import jax.numpy as jnp
from jax.experimental import pallas as pl
from jax.experimental.pallas import tpu as pltpu

_LANE = 128
_TARGET_TILE_BYTES = 2 << 20  # ~2 MiB blocks: >=85% of HBM copy roofline


def _copy_kernel(x_ref, o_ref):
    # Identity "backend engine": copy the current tile input -> output.
    o_ref[...] = x_ref[...]


def _row_multiple(dtype) -> int:
    """Sublane packing multiple for the row (second-minor) block dim."""
    itemsize = jnp.dtype(dtype).itemsize
    return max(8, 32 // max(itemsize, 1))  # f32: 8, bf16: 16, int8/fp8: 32


def _run_backend_engine(x: jnp.ndarray,
                        *,
                        target_tile_bytes: int = _TARGET_TILE_BYTES) -> jnp.ndarray:
    """Identity backend engine: lane-dense tiled HBM->HBM copy via Pallas."""
    orig_shape = x.shape
    dtype = x.dtype
    itemsize = jnp.dtype(dtype).itemsize
    row_mult = _row_multiple(dtype)

    flat = x.reshape(-1)
    total = int(flat.shape[0])

    # --- Choose a lane-dense slab (rows, lane), lane a large multiple of 128,
    # independent of the model's spatial dims.
    lane = None
    for cand in (2048, 1024, 512, 256, 128):
        if total % cand == 0:
            lane = cand
            break
    pad = 0
    if lane is None:
        # Rare case (total not a multiple of 128): pad the flat slab so it
        # tiles cleanly, copy, then slice the padding back off. This replaces
        # the old whole-array-block fallback that could blow VMEM.
        lane = _LANE
        chunk = row_mult * lane
        pad = (-total) % chunk
        flat = jnp.pad(flat, (0, pad))
    padded = total + pad
    rows = padded // lane

    # --- Row tile: aim for ~target_tile_bytes per block, respecting the
    # sublane multiple; fall back to the full row extent (always legal).
    rt = max(1, target_tile_bytes // (lane * itemsize))
    if rt >= rows:
        row_tile = rows                       # full extent -> legal block dim
    else:
        row_tile = max(row_mult, (rt // row_mult) * row_mult)

    x2d = flat.reshape(rows, lane)
    grid = (pl.cdiv(rows, row_tile),)         # ragged tail handled by Pallas

    y2d = pl.pallas_call(
        _copy_kernel,
        out_shape=jax.ShapeDtypeStruct((rows, lane), dtype),
        grid_spec=pltpu.PrefetchScalarGridSpec(
            num_scalar_prefetch=0,
            grid=grid,
            in_specs=[pl.BlockSpec((row_tile, lane), lambda i: (i, 0))],
            out_specs=pl.BlockSpec((row_tile, lane), lambda i: (i, 0)),
        ),
        compiler_params=pltpu.CompilerParams(
            dimension_semantics=("parallel",)),  # v7x: both TCs split the grid
        cost_estimate=pl.CostEstimate(
            flops=0, transcendentals=0,
            bytes_accessed=2 * padded * itemsize),
    )(x2d)

    y_flat = y2d.reshape(-1)
    if pad:
        y_flat = y_flat[:total]
    return y_flat.reshape(orig_shape)


class BaseBackendModelPallas:
    """JAX/Pallas analogue of mmdeploy's BaseBackendModel.

    Holds input/output names from a (synthetic) deploy config and runs the
    wrapped backend engine — here a Pallas identity copy kernel standing in for
    the backend inference engine, since forward() is abstract in the reference.
    A real identity backend could simply return `x` (zero HBM traffic); the
    kernel is kept as the stand-in for an actual engine's compute.
    """

    def __init__(self, deploy_cfg: dict = None):
        input_names = output_names = None
        if deploy_cfg is not None:
            ir_config = deploy_cfg.get("ir_config", {})
            output_names = ir_config.get("output_names", None)
            input_names = ir_config.get("input_names", None)
        self.input_name = input_names[0] if input_names else "input"
        self.output_names = output_names if output_names else ["output"]

    def forward(self, x: jnp.ndarray) -> Dict[str, jnp.ndarray]:
        # TODO(synk): forward() is abstract in BaseBackendModel; concrete
        # subclasses attach task-specific post-processing. Here the backend
        # engine is the identity pass-through implemented in Pallas.
        y = _run_backend_engine(x)
        return {self.output_names[0]: y}

    def destroy(self):
        # No backend engine resources to release in the synthetic version.
        pass

    def show_result(self, *args, **kwargs):
        # TODO(synk): visualization has no Pallas equivalent.
        raise NotImplementedError


if __name__ == "__main__":
    key = jax.random.PRNGKey(0)
    x = jax.random.normal(key, (2, 4, 16, 16), dtype=jnp.float32)  # NCHW

    deploy_cfg = {"ir_config": {"input_names": ["input"],
                                "output_names": ["output"]}}
    model = BaseBackendModelPallas(deploy_cfg)

    out = model.forward(x)
    y = out[model.output_names[0]]
    jax.block_until_ready(y)

    # Sanity: pass-through must reproduce the input exactly (shape, dtype, values).
    assert y.shape == x.shape and y.dtype == x.dtype
    assert bool(jnp.all(y == x))

    # Exercise the padded-slab fallback path (total elements not % 128).
    x_odd = jax.random.normal(key, (1, 3, 7, 7), dtype=jnp.float32)
    y_odd = _run_backend_engine(x_odd)
    jax.block_until_ready(y_odd)
    assert y_odd.shape == x_odd.shape and bool(jnp.all(y_odd == x_odd))

    print("KERNEL_OK")
</pallas_src>

<mosaic_0001>
module attributes {stable_mosaic.version = 11 : i64} {
  func.func @_copy_kernel(%arg0: i32, %arg1: memref<1x2048xf32, #tpu.memory_space<vmem>>, %arg2: memref<1x2048xf32, #tpu.memory_space<vmem>>) attributes {dimension_semantics = [#tpu.dimension_semantics<parallel>], iteration_bounds = array<i64: 1>, scalar_prefetch = 0 : i64, scratch_operands = 0 : i64, tpu.core_type = #tpu.core_type<tc>, window_params = [{transform_indices = @transform_0, window_bounds = array<i64: 1, 2048>}, {transform_indices = @transform_1, window_bounds = array<i64: 1, 2048>}]} {
    %c0 = arith.constant 0 : index
    %c0_0 = arith.constant 0 : index
    %0 = vector.load %arg1[%c0, %c0_0] : memref<1x2048xf32, #tpu.memory_space<vmem>>, vector<1x2048xf32>
    %c0_1 = arith.constant 0 : index
    %c0_2 = arith.constant 0 : index
    %1 = vector.load %arg2[%c0_1, %c0_2] : memref<1x2048xf32, #tpu.memory_space<vmem>>, vector<1x2048xf32>
    tpu.vector_store %arg2[%c0_1, %c0_2], %0 {strides = array<i32>} : memref<1x2048xf32, #tpu.memory_space<vmem>>, vector<1x2048xf32>,
    return
  }
  func.func @transform_0(%arg0: i32) -> (i32, i32) {
    %c0_i32 = arith.constant 0 : i32
    %c0_i32_0 = arith.constant 0 : i32
    return %arg0, %c0_i32 : i32, i32
  }
  func.func @transform_1(%arg0: i32) -> (i32, i32) {
    %c0_i32 = arith.constant 0 : i32
    %c0_i32_0 = arith.constant 0 : i32
    return %arg0, %c0_i32 : i32, i32
  }
}

</mosaic_0001>

<bundles_post_ra>
// kernel: tpu_custom_call.1
= control target key start
LH: loop header
LB: loop body
LE: loop exit
PB: predicated region body
PF: predicated region fallthrough
CT: control target
= control target key end

     0   :  { %6 = vsyncpa [#allocation3], 0  ;;  %s126_s0 = inlined_call_operand.hbm [shape: f32[1,2048], index: 0, kind: input, shape index: {}]   ;;  %s127_s1 = inlined_call_operand.hbm [shape: f32[1,2048], index: 1, kind: output, shape index: {}]  }
   0x1   :  { %7 = vsyncpa [#allocation4], 0  ;;  %s90_s6 = smov [#allocation2]   ;;  %s42_s10 = scalar_lea.hbm %s126_s0, 256 }
   0x2   :  { %s14_s7 = sshll.u32 %s90_s6, 4  ;;  %p43_p0 = scmp.ne.s32.totalorder %s126_s0, %s42_s10  ;;  %s15_s7 = int_to_ptr.vmem [resolvable:$true] %s14_s7 }
   0x3   :  { %p46_p1 = scmp.lt.u32.totalorder %s42_s10, %s126_s0 }
   0x5   :  { %p48_p2 = pnand %p46_p1, %p43_p0 }
   0x7   :  { %51 = shalt.err (!%p48_p2)
}
   0x8   :  { %s52_s15 = scalar_lea.vmem %s15_s7, 256  ;;  %p57_p4 = scmp.lt.s32.totalorder %s15_s7, %s15_s7 }
   0x9   :  { %p53_p3 = scmp.ne.s32.totalorder %s15_s7, %s52_s15  ;;  %p58_p5 = scmp.lt.s32.totalorder %s52_s15, %s52_s15 }
   0xb   :  { %p59_p6 = por %p58_p5, %p57_p4 }
   0xd   :  { %p60_p7 = pnand %p59_p6, %p53_p3 }
   0xf   :  { %63 = shalt.err (!%p60_p7)
}
  0x10   :  { %17 = dma.hbm_to_vmem [thread:$0]  %s126_s0, 256, %s15_s7, [#allocation3]  }
  0x11   :  { %86 = dma.done.wait [#allocation3], 256  }
  0x12   :  { %87 = vsyncadd [#allocation3], 4294967040  ;;  %s91_s18 = smov [#allocation5]   ;;  %v21_v0 = vld [vmem:[#allocation2] sm:$0xff]  ;;  %v22_v1 = vld [vmem:[#allocation2 + $0x8] sm:$0xff] }
  0x13   :  { %s31_s19 = sshll.u32 %s91_s18, 4  ;;  %23 = vst [vmem:[#allocation5] sm:$0xff] %v21_v0  ;;  %24 = vst [vmem:[#allocation5 + $0x8] sm:$0xff] %v22_v1  ;;  %s32_s19 = int_to_ptr.vmem [resolvable:$true] %s31_s19 }
  0x14   :  { %s64_s20 = scalar_lea.vmem %s32_s19, 256  ;;  %p69_p9 = scmp.lt.s32.totalorder %s32_s19, %s32_s19 }
  0x15   :  { %p65_p8 = scmp.ne.s32.totalorder %s32_s19, %s64_s20  ;;  %p70_p10 = scmp.lt.s32.totalorder %s64_s20, %s64_s20 }
  0x17   :  { %p71_p11 = por %p70_p10, %p69_p9 }
  0x19   :  { %p72_p12 = pnand %p71_p11, %p65_p8 }
  0x1b   :  { %75 = shalt.err (!%p72_p12)
}
  0x1c   :  { %s76_s0 = scalar_lea.hbm %s127_s1, 256 }
  0x1d   :  { %p77_p13 = scmp.ne.s32.totalorder %s127_s1, %s76_s0  ;;  %p80_p0 = scmp.lt.u32.totalorder %s76_s0, %s127_s1 }
  0x1f   :  { %p82_p1 = pnand %p80_p0, %p77_p13 }
  0x21   :  { %85 = shalt.err (!%p82_p1)
}
  0x22   :  { %34 = dma.vmem_to_hbm [thread:$0]  %s32_s19, 256, %s127_s1, [#allocation4]  }
  0x23   :  { %88 = dma.done.wait [#allocation4], 256  }
  0x24   :  { %89 = vsyncadd [#allocation4], 4294967040 }
  0x25   :  { %38 = vsyncpa [#allocation3], 1 }
  0x26   :  { %39 = vsyncpa [#allocation4], 1 }

</bundles_post_ra>
